<compile_context>
chip_gen: v7x
topology: tpu7x:2x2x1
jax: 0.10.0
libtpu: 0.0.40
codegen_flags: <defaults>
</compile_context>

<pallas_src>
import functools

import jax
import jax.numpy as jnp
import numpy as np
from jax.experimental import pallas as pl
from jax.experimental.pallas import tpu as pltpu


# ---------------------------------------------------------------------------
# Helpers
# ---------------------------------------------------------------------------

@functools.lru_cache(maxsize=None)
def _vmem_capacity_bytes():
    """Generation-aware VMEM capacity (v5e/v6e: 128 MiB, v7x: 64 MiB)."""
    try:
        return int(pltpu.get_tpu_info().vmem_capacity_bytes)
    except Exception:
        return 64 * 1024 * 1024


def _divisors(n):
    return [d for d in range(1, n + 1) if n % d == 0]


def _pick_tile_s(S, C, n_batch, budget_bytes):
    """Largest lane-dense spatial tile that fits the VMEM budget.

    Footprint model: the scaling pass holds a double-buffered f32 input tile
    and a double-buffered f32 output tile -> 16 * C * tile_s bytes.
    Also keeps >= 2 total grid steps so both v7x TensorCores have work.
    """
    def fits(t):
        return 16 * C * t * 4 // 4 <= budget_bytes  # 4 buffers * C * t * 4 B

    cands = [t for t in _divisors(S) if (t % 128 == 0 or t == S) and fits(t)]
    if not cands:
        # TODO(synk): support partial / padded tiles for very large spatial
        # extents that are not multiples of 128 and do not fit whole.
        return S
    best = max(cands)
    if n_batch * (S // best) < 2:
        smaller = [t for t in cands if S // t >= 2]
        if smaller:
            best = max(smaller)
    return best


# ---------------------------------------------------------------------------
# Kernels
# ---------------------------------------------------------------------------

def _pool_sum_kernel(x_ref, psum_ref):
    # x_ref: (1, C, tile_s) lane-dense tile; emit per-tile partial channel sums.
    psum_ref[0, 0] = jnp.sum(x_ref[0], axis=1, keepdims=True)  # (C, 1)


def _gate_kernel(pooled_ref, w1t_ref, b1_ref, w2t_ref, b2_ref, gate_ref):
    # pooled: (N, C); w1t: (C, Cr); b1: (1, Cr); w2t: (Cr, C); b2: (1, C)
    h = jnp.dot(pooled_ref[...], w1t_ref[...],
                preferred_element_type=jnp.float32) + b1_ref[...]
    h = jnp.maximum(h, 0.0)                                     # ReLU
    z = jnp.dot(h, w2t_ref[...],
                preferred_element_type=jnp.float32) + b2_ref[...]
    gate_ref[...] = 1.0 / (1.0 + jnp.exp(-z))                   # Sigmoid


def _scale_kernel(x_ref, gate_ref, o_ref):
    # x_ref: (1, C, tile_s); gate_ref: (1, C, 1) -> broadcast over lanes.
    o_ref[0] = (x_ref[0] * gate_ref[0]).astype(o_ref.dtype)


# ---------------------------------------------------------------------------
# Wrapper
# ---------------------------------------------------------------------------

@jax.jit
def sqex_forward(x_nchw, w1, b1, w2, b2):
    """Pallas implementation of SqEx.forward.

    x_nchw : (N, C, H, W) f32
    w1     : (C//r, C)  linear1 weight (PyTorch (out, in) layout)
    b1     : (C//r,)
    w2     : (C, C//r)  linear2 weight
    b2     : (C,)
    """
    N, C, H, W = x_nchw.shape
    Cr = w1.shape[0]
    S = H * W

    cap = _vmem_capacity_bytes()
    vmem_limit = min(cap // 2, 64 * 1024 * 1024)
    tile_s = _pick_tile_s(S, C, N, cap // 4)
    n_t = S // tile_s

    xf = x_nchw.reshape(N, C, S)                  # free reshape, no transpose

    # ---- Pass 1: per-tile partial sums for the global average pool --------
    psum = pl.pallas_call(
        _pool_sum_kernel,
        out_shape=jax.ShapeDtypeStruct((N, n_t, C, 1), jnp.float32),
        grid=(N, n_t),
        in_specs=[pl.BlockSpec((1, C, tile_s), lambda n, t: (n, 0, t))],
        out_specs=pl.BlockSpec((1, 1, C, 1), lambda n, t: (n, t, 0, 0)),
        compiler_params=pltpu.CompilerParams(
            dimension_semantics=("parallel", "parallel"),
            vmem_limit_bytes=vmem_limit),
    )(xf)

    # Tiny cross-tile reduction (N * n_t * C elements) in plain JAX.
    pooled = jnp.sum(psum[..., 0], axis=1) * (1.0 / S)          # (N, C)

    # ---- Pass 2: fused bottleneck MLP (linear -> ReLU -> linear -> sigmoid)
    w1t = jnp.transpose(w1).astype(jnp.float32)                 # (C, Cr)
    w2t = jnp.transpose(w2).astype(jnp.float32)                 # (Cr, C)
    b1r = b1.reshape(1, Cr).astype(jnp.float32)
    b2r = b2.reshape(1, C).astype(jnp.float32)

    gate = pl.pallas_call(
        _gate_kernel,
        out_shape=jax.ShapeDtypeStruct((N, C), jnp.float32),
        grid=(1,),
        in_specs=[
            pl.BlockSpec((N, C), lambda i: (0, 0)),
            pl.BlockSpec((C, Cr), lambda i: (0, 0)),
            pl.BlockSpec((1, Cr), lambda i: (0, 0)),
            pl.BlockSpec((Cr, C), lambda i: (0, 0)),
            pl.BlockSpec((1, C), lambda i: (0, 0)),
        ],
        out_specs=pl.BlockSpec((N, C), lambda i: (0, 0)),
    )(pooled, w1t, b1r, w2t, b2r)

    # ---- Pass 3: channel-wise gating of x (lane-dense tiles) ---------------
    # TODO(synk): for inputs that fit VMEM entirely, keep x resident across
    # passes 1 and 3 to drop the second HBM read.
    out = pl.pallas_call(
        _scale_kernel,
        out_shape=jax.ShapeDtypeStruct((N, C, S), x_nchw.dtype),
        grid=(N, n_t),
        in_specs=[
            pl.BlockSpec((1, C, tile_s), lambda n, t: (n, 0, t)),
            pl.BlockSpec((1, C, 1), lambda n, t: (n, 0, 0)),
        ],
        out_specs=pl.BlockSpec((1, C, tile_s), lambda n, t: (n, 0, t)),
        compiler_params=pltpu.CompilerParams(
            dimension_semantics=("parallel", "parallel"),
            vmem_limit_bytes=vmem_limit),
    )(xf, gate.reshape(N, C, 1))

    return out.reshape(N, C, H, W)


# ---------------------------------------------------------------------------
# Pure-JAX reference (matches PyTorch SqEx.forward)
# ---------------------------------------------------------------------------

def ref_forward(x, w1, b1, w2, b2):
    pooled = x.mean(axis=(2, 3))                                 # (N, C)
    h = jnp.maximum(pooled @ w1.T + b1, 0.0)
    g = 1.0 / (1.0 + jnp.exp(-(h @ w2.T + b2)))
    return x * g[:, :, None, None]


# ---------------------------------------------------------------------------
# Test
# ---------------------------------------------------------------------------

if __name__ == "__main__":
    key = jax.random.PRNGKey(0)
    # SqEx(n_features=32, reduction=2), as instantiated inside GlobalLocal.
    N, C, H, W = 2, 32, 16, 16
    r = 2
    Cr = C // r

    kx, k1, kb1, k2, kb2 = jax.random.split(key, 5)
    x = jax.random.normal(kx, (N, C, H, W), jnp.float32)
    w1 = jax.random.normal(k1, (Cr, C), jnp.float32) * (1.0 / np.sqrt(C))
    b1 = 0.1 * jax.random.normal(kb1, (Cr,), jnp.float32)
    w2 = jax.random.normal(k2, (C, Cr), jnp.float32) * (1.0 / np.sqrt(Cr))
    b2 = 0.1 * jax.random.normal(kb2, (C,), jnp.float32)

    out = jax.block_until_ready(sqex_forward(x, w1, b1, w2, b2))
    ref = ref_forward(x, w1, b1, w2, b2)
    np.testing.assert_allclose(np.asarray(out), np.asarray(ref),
                               rtol=2e-3, atol=2e-3)

    print("KERNEL_OK")
</pallas_src>

<mosaic_0001>
module attributes {stable_mosaic.version = 11 : i64} {
  func.func @_pool_sum_kernel(%arg0: i32, %arg1: i32, %arg2: memref<1x32x256xf32, #tpu.memory_space<vmem>>, %arg3: memref<1x1x32x1xf32, #tpu.memory_space<vmem>>) attributes {dimension_semantics = [#tpu.dimension_semantics<parallel>, #tpu.dimension_semantics<parallel>], iteration_bounds = array<i64: 2, 1>, scalar_prefetch = 0 : i64, scratch_operands = 0 : i64, tpu.core_type = #tpu.core_type<tc>, window_params = [{transform_indices = @transform_0, window_bounds = array<i64: 1, 32, 256>}, {transform_indices = @transform_1, window_bounds = array<i64: 1, 1, 32, 1>}]} {
    %c0 = arith.constant 0 : index
    %c0_0 = arith.constant 0 : index
    %c0_1 = arith.constant 0 : index
    %0 = vector.load %arg2[%c0, %c0_0, %c0_1] : memref<1x32x256xf32, #tpu.memory_space<vmem>>, vector<1x32x256xf32>
    %1 = vector.shape_cast %0 : vector<1x32x256xf32> to vector<32x256xf32>
    %cst = arith.constant dense<0.000000e+00> : vector<32xf32>
    %2 = vector.multi_reduction <add>, %1, %cst [1] : vector<32x256xf32> to vector<32xf32>
    %3 = vector.shape_cast %2 : vector<32xf32> to vector<32x1xf32>
    %c0_2 = arith.constant 0 : index
    %c0_3 = arith.constant 0 : index
    %c0_4 = arith.constant 0 : index
    %c0_5 = arith.constant 0 : index
    %4 = vector.load %arg3[%c0_2, %c0_3, %c0_4, %c0_5] : memref<1x1x32x1xf32, #tpu.memory_space<vmem>>, vector<1x1x32x1xf32>
    %5 = vector.shape_cast %4 : vector<1x1x32x1xf32> to vector<32x1xf32>
    %6 = vector.shape_cast %3 : vector<32x1xf32> to vector<1x1x32x1xf32>
    tpu.vector_store %arg3[%c0_2, %c0_3, %c0_4, %c0_5], %6 {strides = array<i32>} : memref<1x1x32x1xf32, #tpu.memory_space<vmem>>, vector<1x1x32x1xf32>,
    return
  }
  func.func @transform_0(%arg0: i32, %arg1: i32) -> (i32, i32, i32) {
    %c0_i32 = arith.constant 0 : i32
    %c0_i32_0 = arith.constant 0 : i32
    return %arg0, %c0_i32, %arg1 : i32, i32, i32
  }
  func.func @transform_1(%arg0: i32, %arg1: i32) -> (i32, i32, i32, i32) {
    %c0_i32 = arith.constant 0 : i32
    %c0_i32_0 = arith.constant 0 : i32
    %c0_i32_1 = arith.constant 0 : i32
    return %arg0, %arg1, %c0_i32, %c0_i32_0 : i32, i32, i32, i32
  }
}

module attributes {stable_mosaic.version = 11 : i64} {
  func.func @_scale_kernel(%arg0: i32, %arg1: i32, %arg2: memref<1x32x256xf32, #tpu.memory_space<vmem>>, %arg3: memref<1x32x1xf32, #tpu.memory_space<vmem>>, %arg4: memref<1x32x256xf32, #tpu.memory_space<vmem>>) attributes {dimension_semantics = [#tpu.dimension_semantics<parallel>, #tpu.dimension_semantics<parallel>], iteration_bounds = array<i64: 2, 1>, scalar_prefetch = 0 : i64, scratch_operands = 0 : i64, tpu.core_type = #tpu.core_type<tc>, window_params = [{transform_indices = @transform_0, window_bounds = array<i64: 1, 32, 256>}, {transform_indices = @transform_1, window_bounds = array<i64: 1, 32, 1>}, {transform_indices = @transform_2, window_bounds = array<i64: 1, 32, 256>}]} {
    %c0 = arith.constant 0 : index
    %c0_0 = arith.constant 0 : index
    %c0_1 = arith.constant 0 : index
    %0 = vector.load %arg2[%c0, %c0_0, %c0_1] : memref<1x32x256xf32, #tpu.memory_space<vmem>>, vector<1x32x256xf32>
    %1 = vector.shape_cast %0 : vector<1x32x256xf32> to vector<32x256xf32>
    %c0_2 = arith.constant 0 : index
    %c0_3 = arith.constant 0 : index
    %c0_4 = arith.constant 0 : index
    %2 = vector.load %arg3[%c0_2, %c0_3, %c0_4] : memref<1x32x1xf32, #tpu.memory_space<vmem>>, vector<1x32x1xf32>
    %3 = vector.shape_cast %2 : vector<1x32x1xf32> to vector<32x1xf32>
    %4 = vector.broadcast %3 : vector<32x1xf32> to vector<32x256xf32>
    %5 = arith.mulf %1, %4 : vector<32x256xf32>
    %c0_5 = arith.constant 0 : index
    %c0_6 = arith.constant 0 : index
    %c0_7 = arith.constant 0 : index
    %6 = vector.load %arg4[%c0_5, %c0_6, %c0_7] : memref<1x32x256xf32, #tpu.memory_space<vmem>>, vector<1x32x256xf32>
    %7 = vector.shape_cast %6 : vector<1x32x256xf32> to vector<32x256xf32>
    %8 = vector.shape_cast %5 : vector<32x256xf32> to vector<1x32x256xf32>
    tpu.vector_store %arg4[%c0_5, %c0_6, %c0_7], %8 {strides = array<i32>} : memref<1x32x256xf32, #tpu.memory_space<vmem>>, vector<1x32x256xf32>,
    return
  }
  func.func @transform_0(%arg0: i32, %arg1: i32) -> (i32, i32, i32) {
    %c0_i32 = arith.constant 0 : i32
    %c0_i32_0 = arith.constant 0 : i32
    return %arg0, %c0_i32, %arg1 : i32, i32, i32
  }
  func.func @transform_1(%arg0: i32, %arg1: i32) -> (i32, i32, i32) {
    %c0_i32 = arith.constant 0 : i32
    %c0_i32_0 = arith.constant 0 : i32
    %c0_i32_1 = arith.constant 0 : i32
    return %arg0, %c0_i32, %c0_i32_0 : i32, i32, i32
  }
  func.func @transform_2(%arg0: i32, %arg1: i32) -> (i32, i32, i32) {
    %c0_i32 = arith.constant 0 : i32
    %c0_i32_0 = arith.constant 0 : i32
    return %arg0, %c0_i32, %arg1 : i32, i32, i32
  }
}

module attributes {stable_mosaic.version = 11 : i64} {
  func.func @_gate_kernel(%arg0: i32, %arg1: memref<2x32xf32, #tpu.memory_space<vmem>>, %arg2: memref<32x16xf32, #tpu.memory_space<vmem>>, %arg3: memref<1x16xf32, #tpu.memory_space<vmem>>, %arg4: memref<16x32xf32, #tpu.memory_space<vmem>>, %arg5: memref<1x32xf32, #tpu.memory_space<vmem>>, %arg6: memref<2x32xf32, #tpu.memory_space<vmem>>) attributes {dimension_semantics = [#tpu.dimension_semantics<arbitrary>], iteration_bounds = array<i64: 1>, scalar_prefetch = 0 : i64, scratch_operands = 0 : i64, tpu.core_type = #tpu.core_type<tc>, window_params = [{pipeline_mode = #tpu.pipeline_mode<synchronous>, transform_indices = @transform_0, window_bounds = array<i64: 2, 32>}, {pipeline_mode = #tpu.pipeline_mode<synchronous>, transform_indices = @transform_1, window_bounds = array<i64: 32, 16>}, {pipeline_mode = #tpu.pipeline_mode<synchronous>, transform_indices = @transform_2, window_bounds = array<i64: 1, 16>}, {pipeline_mode = #tpu.pipeline_mode<synchronous>, transform_indices = @transform_3, window_bounds = array<i64: 16, 32>}, {pipeline_mode = #tpu.pipeline_mode<synchronous>, transform_indices = @transform_4, window_bounds = array<i64: 1, 32>}, {pipeline_mode = #tpu.pipeline_mode<synchronous>, transform_indices = @transform_5, window_bounds = array<i64: 2, 32>}]} {
    %c0 = arith.constant 0 : index
    %c0_0 = arith.constant 0 : index
    %0 = vector.load %arg1[%c0, %c0_0] : memref<2x32xf32, #tpu.memory_space<vmem>>, vector<2x32xf32>
    %c0_1 = arith.constant 0 : index
    %c0_2 = arith.constant 0 : index
    %1 = vector.load %arg2[%c0_1, %c0_2] : memref<32x16xf32, #tpu.memory_space<vmem>>, vector<32x16xf32>
    %cst = arith.constant dense<0.000000e+00> : vector<2x16xf32>
    %2 = tpu.matmul %0, %1, %cst {dimension_numbers = #tpu.dot_dimension_numbers<[1], [0], [0], [1], [0, 0, 1, 1], [], []>} : vector<2x32xf32>, vector<32x16xf32>, vector<2x16xf32> -> vector<2x16xf32>
    %c0_3 = arith.constant 0 : index
    %c0_4 = arith.constant 0 : index
    %3 = vector.load %arg3[%c0_3, %c0_4] : memref<1x16xf32, #tpu.memory_space<vmem>>, vector<1x16xf32>
    %4 = vector.broadcast %3 : vector<1x16xf32> to vector<2x16xf32>
    %5 = arith.addf %2, %4 : vector<2x16xf32>
    %cst_5 = arith.constant 0.000000e+00 : f32
    %6 = vector.broadcast %cst_5 : f32 to vector<2x16xf32>
    %7 = arith.maximumf %5, %6 : vector<2x16xf32>
    %c0_6 = arith.constant 0 : index
    %c0_7 = arith.constant 0 : index
    %8 = vector.load %arg4[%c0_6, %c0_7] : memref<16x32xf32, #tpu.memory_space<vmem>>, vector<16x32xf32>
    %cst_8 = arith.constant dense<0.000000e+00> : vector<2x32xf32>
    %9 = tpu.matmul %7, %8, %cst_8 {dimension_numbers = #tpu.dot_dimension_numbers<[1], [0], [0], [1], [0, 0, 1, 1], [], []>} : vector<2x16xf32>, vector<16x32xf32>, vector<2x32xf32> -> vector<2x32xf32>
    %c0_9 = arith.constant 0 : index
    %c0_10 = arith.constant 0 : index
    %10 = vector.load %arg5[%c0_9, %c0_10] : memref<1x32xf32, #tpu.memory_space<vmem>>, vector<1x32xf32>
    %11 = vector.broadcast %10 : vector<1x32xf32> to vector<2x32xf32>
    %12 = arith.addf %9, %11 : vector<2x32xf32>
    %cst_11 = arith.constant 0.000000e+00 : f32
    %13 = vector.broadcast %cst_11 : f32 to vector<2x32xf32>
    %14 = arith.subf %13, %12 : vector<2x32xf32>
    %15 = math.exp %14 : vector<2x32xf32>
    %cst_12 = arith.constant 1.000000e+00 : f32
    %16 = vector.broadcast %cst_12 : f32 to vector<2x32xf32>
    %17 = arith.addf %16, %15 : vector<2x32xf32>
    %cst_13 = arith.constant 1.000000e+00 : f32
    %18 = vector.broadcast %cst_13 : f32 to vector<2x32xf32>
    %19 = arith.divf %18, %17 : vector<2x32xf32>
    %c0_14 = arith.constant 0 : index
    %c0_15 = arith.constant 0 : index
    %20 = vector.load %arg6[%c0_14, %c0_15] : memref<2x32xf32, #tpu.memory_space<vmem>>, vector<2x32xf32>
    tpu.vector_store %arg6[%c0_14, %c0_15], %19 {strides = array<i32>} : memref<2x32xf32, #tpu.memory_space<vmem>>, vector<2x32xf32>,
    return
  }
  func.func @transform_0(%arg0: i32) -> (i32, i32) {
    %c0_i32 = arith.constant 0 : i32
    %c0_i32_0 = arith.constant 0 : i32
    %c0_i32_1 = arith.constant 0 : i32
    return %c0_i32, %c0_i32_0 : i32, i32
  }
  func.func @transform_1(%arg0: i32) -> (i32, i32) {
    %c0_i32 = arith.constant 0 : i32
    %c0_i32_0 = arith.constant 0 : i32
    %c0_i32_1 = arith.constant 0 : i32
    return %c0_i32, %c0_i32_0 : i32, i32
  }
  func.func @transform_2(%arg0: i32) -> (i32, i32) {
    %c0_i32 = arith.constant 0 : i32
    %c0_i32_0 = arith.constant 0 : i32
    %c0_i32_1 = arith.constant 0 : i32
    return %c0_i32, %c0_i32_0 : i32, i32
  }
  func.func @transform_3(%arg0: i32) -> (i32, i32) {
    %c0_i32 = arith.constant 0 : i32
    %c0_i32_0 = arith.constant 0 : i32
    %c0_i32_1 = arith.constant 0 : i32
    return %c0_i32, %c0_i32_0 : i32, i32
  }
  func.func @transform_4(%arg0: i32) -> (i32, i32) {
    %c0_i32 = arith.constant 0 : i32
    %c0_i32_0 = arith.constant 0 : i32
    %c0_i32_1 = arith.constant 0 : i32
    return %c0_i32, %c0_i32_0 : i32, i32
  }
  func.func @transform_5(%arg0: i32) -> (i32, i32) {
    %c0_i32 = arith.constant 0 : i32
    %c0_i32_0 = arith.constant 0 : i32
    %c0_i32_1 = arith.constant 0 : i32
    return %c0_i32, %c0_i32_0 : i32, i32
  }
}

</mosaic_0001>

<bundles_post_ra>
// kernel: sqex_forward.3
= control target key start
LH: loop header
LB: loop body
LE: loop exit
PB: predicated region body
PF: predicated region fallthrough
CT: control target
= control target key end

     0   :  { %s340_s6 = smov 0   ;;  %s342_s7 = smov 0   ;;  %s373_s0 = inlined_call_operand.vmem [shape: f32[2,32,256], index: 0, kind: input, shape index: {}]   ;;  %s374_s1 = inlined_call_operand.vmem [shape: f32[2,1,32,1], index: 1, kind: output, shape index: {}]  }
   0x1   :  { %s344_s8 = smov 0  }
   0x2 LB: > { %s23_s9 = sadd.s32 1, %s324_s7  ;;  %p273_p0 = scmp.ge.s32.totalorder %s328_s8, 1  ;;  %s328_s8 = sphi %s344_s8, %s11_s8   ;;  %s324_s7 = sphi %s342_s7, %s376_s7   ;;  %s320_s6 = sphi %s340_s6, %s375_s6  }
   0x3   : > { %p25_p1 = scmp.ge.s32.totalorder %s23_s9, 2  ;;  %p108_p2 = scmp.lt.s32.totalorder %s328_s8, 3 }
   0x5   : > { %s378_s9 = smov (%p25_p1, %s23_s9), 0  ;;  %p109_p3 = pnand %p273_p0, %p108_p2 }
   0x6   : > { %p137_p4 = scmp.lt.s32.totalorder (!%p109_p3), %s320_s6, 1  ;;  %vm175_vm0 = vcmask (!%p109_p3), 7168  }
   0x7   : > { %112 = sbr.rel (%p109_p3) target bundleno = 168 (0xa8), region = 24 }
   0xe   : > { %s380_s6 = smov (!%p137_p4, %s320_s6), 1 }
   0xf   : > { %s280_s10 = sshll.u32 %s380_s6, 6  ;;  %s281_s14 = sshll.u32 %s380_s6, 5 }
  0x10   : > { %s144_s13 = scalar_lea.vmem %s373_s0, %s280_s10  ;;  %s154_s17 = scalar_lea.vmem %s374_s1, %s281_s14 }
  0x11   : > { %v159_v0 = vld [vmem:[%s144_s13 + $0x20] sm:$0xff]  ;;  %v160_v1 = vld [vmem:[%s144_s13 + $0x28] sm:$0xff]  ;;  %v161_v5 = vld [vmem:[%s144_s13 + $0x30] sm:$0xff] }
  0x12   : > { %v155_v2 = vld [vmem:[%s144_s13] sm:$0xff]  ;;  %v169_v3 = vadd.f32 %v160_v1, %v159_v0  ;;  %v156_v4 = vld [vmem:[%s144_s13 + $0x8] sm:$0xff]  ;;  %v162_v6 = vld [vmem:[%s144_s13 + $0x38] sm:$0xff] }
  0x13   : > { %v163_v7 = vadd.f32 %v156_v4, %v155_v2  ;;  %v157_v8 = vld [vmem:[%s144_s13 + $0x10] sm:$0xff]  ;;  %v158_v9 = vld [vmem:[%s144_s13 + $0x18] sm:$0xff]  ;;  %v172_v10 = vadd.f32 %v162_v6, %v161_v5 }
  0x14   : > { %170 = vadd.xlane.f32.xlu1 %v169_v3  ;;  %v166_v11 = vadd.f32 %v158_v9, %v157_v8 }
  0x15   : > { %164 = vadd.xlane.f32.xlu0 %v163_v7 }
  0x18   : > { %173 = vadd.xlane.f32.xlu1 %v172_v10 }
  0x19   : > { %167 = vadd.xlane.f32.xlu0 %v166_v11 }
  0xa1   : > { %v171_v12 = vpop.xlane.xlu1 %170 }
  0xa2   : > { %178 = vst.msk [vmem:[%s154_s17 + $0x10] sm:$0xff] %vm175_vm0, %v171_v12  ;;  %v165_v13 = vpop.xlane.xlu0 %164 }
  0xa3   : > { %176 = vst.msk [vmem:[%s154_s17] sm:$0xff] %vm175_vm0, %v165_v13 }
  0xa5   : > { %v174_v14 = vpop.xlane.xlu1 %173 }
  0xa6   : > { %179 = vst.msk [vmem:[%s154_s17 + $0x18] sm:$0xff] %vm175_vm0, %v174_v14  ;;  %v168_v15 = vpop.xlane.xlu0 %167 }
  0xa7   : > { %177 = vst.msk [vmem:[%s154_s17 + $0x8] sm:$0xff] %vm175_vm0, %v168_v15 }
  0xa8 PF: > { %s11_s8 = sadd.s32 1, %s328_s8   ;;  %s375_s6 = smov %s324_s7 }
  0xa9   : > { %p8_p5 = scmp.ge.s32.totalorder %s11_s8, 4   ;;  %s376_s7 = smov %s378_s9 }
  0xab   :  { %10 = sbr.rel (!%p8_p5) target bundleno = 2 (0x2), region = 54 }

// kernel: sqex_forward.5
= control target key start
LH: loop header
LB: loop body
LE: loop exit
PB: predicated region body
PF: predicated region fallthrough
CT: control target
= control target key end

     0   :  { %s433_s9 = smov 0   ;;  %s435_s10 = smov 0   ;;  %s469_s0 = inlined_call_operand.vmem [shape: f32[2,32,256], index: 0, kind: input, shape index: {}]   ;;  %s470_s1 = inlined_call_operand.vmem [shape: f32[2,32,1], index: 1, kind: input, shape index: {}]   ;;  %s471_s2 = inlined_call_operand.vmem [shape: f32[2,32,256], index: 2, kind: output, shape index: {}]  }
   0x1   :  { %s437_s11 = smov 0  }
   0x2 LB: > { %s24_s12 = sadd.s32 1, %s411_s10  ;;  %p354_p0 = scmp.ge.s32.totalorder %s415_s11, 1  ;;  %s415_s11 = sphi %s437_s11, %s12_s11   ;;  %s411_s10 = sphi %s435_s10, %s473_s10   ;;  %s407_s9 = sphi %s433_s9, %s472_s9  }
   0x3   : > { %p26_p1 = scmp.ge.s32.totalorder %s24_s12, 2  ;;  %p143_p2 = scmp.lt.s32.totalorder %s415_s11, 3 }
   0x5   : > { %s475_s12 = smov (%p26_p1, %s24_s12), 0  ;;  %p144_p3 = pnand %p354_p0, %p143_p2 }
   0x6   : > { %p179_p4 = scmp.lt.s32.totalorder (!%p144_p3), %s407_s9, 1  ;;  %v417_v0 = vmov (!%p144_p3), 0  }
   0x7   : > { %147 = sbr.rel (%p144_p3) target bundleno = 154 (0x9a), region = 28  ;;  %392 = vset.pattern.permute.xlu1 (!%p144_p3), %v417_v0  ;;  %391 = vset.pattern.permute.xlu0 (!%p144_p3), %v417_v0 }
   0xe   : > { %s477_s9 = smov (!%p179_p4, %s407_s9), 1 }
   0xf   : > { %s364_s13 = sshll.u32 %s477_s9, 5  ;;  %s363_s17 = sshll.u32 %s477_s9, 6 }
  0x10   : > { %s192_s16 = scalar_lea.vmem %s470_s1, %s364_s13  ;;  %s186_s20 = scalar_lea.vmem %s469_s0, %s363_s17 }
  0x11   : > { %v213_v1 = vld [vmem:[%s192_s16 + $0x10] sm:$0xff]  ;;  %v211_v2 = vld [vmem:[%s192_s16] sm:$0xff]  ;;  %v214_v3 = vld [vmem:[%s192_s16 + $0x18] sm:$0xff]  ;;  %s201_s23 = scalar_lea.vmem %s471_s2, %s363_s17 }
  0x12   : > { %227 = vperm.xlu1 %392, %v213_v1   ;;  %217 = vperm.xlu0 %391, %v211_v2   ;;  %v212_v4 = vld [vmem:[%s192_s16 + $0x8] sm:$0xff]  ;;  %v207_v5 = vld [vmem:[%s186_s20 + $0x20] sm:$0xff]  ;;  %v209_v15 = vld [vmem:[%s186_s20 + $0x30] sm:$0xff] }
  0x13   : > { %v208_v6 = vld [vmem:[%s186_s20 + $0x28] sm:$0xff]  ;;  %v203_v7 = vld [vmem:[%s186_s20] sm:$0xff]  ;;  %v210_v16 = vld [vmem:[%s186_s20 + $0x38] sm:$0xff] }
  0x14   : > { %v204_v8 = vld [vmem:[%s186_s20 + $0x8] sm:$0xff]  ;;  %v205_v17 = vld [vmem:[%s186_s20 + $0x10] sm:$0xff]  ;;  %v206_v18 = vld [vmem:[%s186_s20 + $0x18] sm:$0xff] }
  0x16   : > { %232 = vperm.xlu1 %392, %v214_v3   ;;  %222 = vperm.xlu0 %391, %v212_v4  }
  0x91   : > { %v228_v9 = vpop.permute.xlu1 %227  ;;  %v218_v10 = vpop.permute.xlu0 %217 }
  0x92   : > { %v239_v11 = vmul.f32 %v228_v9, %v207_v5  ;;  %v240_v12 = vmul.f32 %v228_v9, %v208_v6  ;;  %v235_v13 = vmul.f32 %v218_v10, %v203_v7  ;;  %v236_v14 = vmul.f32 %v218_v10, %v204_v8 }
  0x94   : > { %247 = vst [vmem:[%s201_s23 + $0x20] sm:$0xff] %v239_v11  ;;  %248 = vst [vmem:[%s201_s23 + $0x28] sm:$0xff] %v240_v12 }
  0x95   : > { %243 = vst [vmem:[%s201_s23] sm:$0xff] %v235_v13  ;;  %244 = vst [vmem:[%s201_s23 + $0x8] sm:$0xff] %v236_v14  ;;  %v233_v19 = vpop.permute.xlu1 %232  ;;  %v223_v20 = vpop.permute.xlu0 %222 }
  0x96   : > { %v241_v21 = vmul.f32 %v233_v19, %v209_v15  ;;  %v242_v22 = vmul.f32 %v233_v19, %v210_v16  ;;  %v237_v23 = vmul.f32 %v223_v20, %v205_v17  ;;  %v238_v24 = vmul.f32 %v223_v20, %v206_v18 }
  0x98   : > { %249 = vst [vmem:[%s201_s23 + $0x30] sm:$0xff] %v241_v21  ;;  %250 = vst [vmem:[%s201_s23 + $0x38] sm:$0xff] %v242_v22 }
  0x99   : > { %245 = vst [vmem:[%s201_s23 + $0x10] sm:$0xff] %v237_v23  ;;  %246 = vst [vmem:[%s201_s23 + $0x18] sm:$0xff] %v238_v24 }
  0x9a PF: > { %s12_s11 = sadd.s32 1, %s415_s11   ;;  %s472_s9 = smov %s411_s10 }
  0x9b   : > { %p9_p5 = scmp.ge.s32.totalorder %s12_s11, 4   ;;  %s473_s10 = smov %s475_s12 }
  0x9d   :  { %11 = sbr.rel (!%p9_p5) target bundleno = 2 (0x2), region = 61 }

// kernel: sqex_forward.4
= control target key start
LH: loop header
LB: loop body
LE: loop exit
PB: predicated region body
PF: predicated region fallthrough
CT: control target
= control target key end

     0   :  { %v248_v0 = vmov 0.0|0.0   ;;  %vm249_vm0 = vmmov 0   ;;  %v250_v4 = vmov 0.0   ;;  %vm32_vm1 = vcmask 261120   ;;  %s311_s1 = inlined_call_operand.vmem [shape: f32[32,16], index: 1, kind: input, shape index: {}]   ;;  %s312_s0 = inlined_call_operand.vmem [shape: f32[2,32], index: 0, kind: input, shape index: {}]   ;;  %s313_s3 = inlined_call_operand.vmem [shape: f32[16,32], index: 3, kind: input, shape index: {}]   ;;  %s314_s2 = inlined_call_operand.vmem [shape: f32[1,16], index: 2, kind: input, shape index: {}]   ;;  %s315_s4 = inlined_call_operand.vmem [shape: f32[1,32], index: 4, kind: input, shape index: {}]   ;;  %s316_s5 = inlined_call_operand.vmem [shape: f32[2,32], index: 5, kind: output, shape index: {}]  }
   0x1   :  { %232 = vmatprep.subr.bf16.mxu0 %v248_v0  ;;  %v21_v1 = vld [vmem:[%s311_s1] sm:$0xff]  ;;  %v22_v2 = vld [vmem:[%s311_s1 + $0x8] sm:$0xff]  ;;  %v23_v3 = vld [vmem:[%s311_s1 + $0x10] sm:$0xff]  ;;  %222 = vmatprep.mubr.msk.f32.mxu0 %vm249_vm0, %v250_v4  ;;  %vm116_vm2 = vcmask 130048   ;;  %vm196_vm3 = vcmask 254976  }
   0x2   :  { %v233_v5 = vpack.c.bf16 %v22_v2, %v21_v1  ;;  %v24_v6 = vld [vmem:[%s311_s1 + $0x18] sm:$0xff]  ;;  %238 = vmatprep.subr.bf16.mxu1 %v248_v0  ;;  %229 = vmatprep.mubr.msk.f32.mxu1 %vm249_vm0, %v250_v4  ;;  %v20_v8 = vld [vmem:[%s312_s0] sm:$0x3]  ;;  %v108_v10 = vld [vmem:[%s313_s3 + $0x8] sm:$0xff] }
   0x3   :  { %v236_v7 = vpack.c.bf16 %v24_v6, %v23_v3  ;;  %v107_v9 = vld [vmem:[%s313_s3] sm:$0xff] }
   0x4   :  { %234 = vmatpush3.bf16.msra.mxu0 %v233_v5  ;;  %v239_v11 = vpack.c.bf16 %v108_v10, %v107_v9  ;;  %v202_v12 = vld [vmem:[%s314_s2] ss:$0 sm:$0xff] }
   0x5   :  { %235 = vmatprep.subr.bf16.mxu0 %v248_v0  ;;  %v204_v17 = vld [vmem:[%s315_s4] ss:$0 sm:$0xff] }
   0x6   :  { %240 = vmatpush3.bf16.msra.mxu1 %v239_v11 }
   0x8   :  { %237 = vmatpush3.bf16.msra.mxu0 %v236_v7 }
   0xb   :  { %223 = vmatmul.mubr.msk.f32.vlgmr.msra.gmra.mrb[0].mxu0 %vm32_vm1, %v20_v8 }
  0xde   :  { %v102_v13 = vpop.f32.mrb[0].mxu0 }
  0xdf   :  { %v103_v14 = vadd.f32 %v202_v12, %v102_v13  ;;  %v224_v15 = vpop.f32.mrb[1].mxu0 }
  0xe1   :  { %v106_v16 = vmax.f32 %v103_v14, 0.0 }
  0xe3   :  { %230 = vmatmul.mubr.msk.f32.vlgmr.msra.gmra.mrb[0].mxu1 %vm116_vm2, %v106_v16 }
 0x1b6   :  { %v186_v18 = vpop.f32.mrb[0].mxu1 }
 0x1b7   :  { %v187_v19 = vadd.f32 %v204_v17, %v186_v18  ;;  %v231_v20 = vpop.f32.mrb[1].mxu1 }
 0x1b9   :  { %v190_v21 = vsub.f32 0.0, %v187_v19 }
 0x1bb   :  { %v191_v22 = vmul.f32 1.442695, %v190_v21 }
 0x1bd   :  { %244 = vpow2.f32 %v191_v22 }
 0x1c7   :  { %v245_v23 = vpop.eup %244 }
 0x1c8   :  { %v193_v24 = vadd.f32 1.0, %v245_v23 }
 0x1ca   :  { %246 = vrcp.f32 %v193_v24 }
 0x1d4   :  { %v247_v25 = vpop.eup %246 }
 0x1d5   :  { %197 = vst.msk [vmem:[%s316_s5] sm:$0x3] %vm196_vm3, %v247_v25 }

</bundles_post_ra>
